<compile_context>
chip_gen: v7x
topology: tpu7x:2x2x1
jax: 0.10.0
libtpu: 0.0.40
codegen_flags: <defaults>
</compile_context>

<pallas_src>
import functools

import jax
import jax.numpy as jnp
from jax.experimental import pallas as pl
from jax.experimental.pallas import tpu as pltpu


def _round_up(a, b):
    return (a + b - 1) // b * b


def _cdiv(a, b):
    return (a + b - 1) // b


# --------------------------------------------------------------------------------------
# Pass 1: per-lane sum / sum-of-squares of the packed conv output.
# Grid = (NC "parallel" core axis, M-tile "arbitrary" axis).  Each core owns one (8, CL)
# accumulator block (fixed block index over the inner axis), initialized via pl.when.
# --------------------------------------------------------------------------------------
def _matmul_stats_kernel(p_ref, w_ref, sum_ref, sq_ref):
    y = jnp.dot(p_ref[...], w_ref[...], preferred_element_type=jnp.float32)  # [TM1, CL] f32

    @pl.when(pl.program_id(1) == 0)
    def _():
        sum_ref[...] = jnp.zeros_like(sum_ref)
        sq_ref[...] = jnp.zeros_like(sq_ref)

    ps = jnp.sum(y, axis=0, keepdims=True)        # (1, CL)
    pq = jnp.sum(y * y, axis=0, keepdims=True)    # (1, CL)
    sum_ref[...] += jnp.broadcast_to(ps, sum_ref.shape)
    sq_ref[...] += jnp.broadcast_to(pq, sq_ref.shape)


# --------------------------------------------------------------------------------------
# Pass 2: matmul + fused affine (+ optional LeakyReLU), lane-packed (TM2, CL) output tile.
# Also serves the bn_act=False path with scale=1, shift=bias, apply_act=False.
# --------------------------------------------------------------------------------------
def _matmul_affine_kernel(p_ref, w_ref, scale_ref, shift_ref, o_ref, *, slope, apply_act):
    y = jnp.dot(p_ref[...], w_ref[...], preferred_element_type=jnp.float32)
    y = y * scale_ref[...] + shift_ref[...]
    if apply_act:
        y = jnp.where(y >= 0, y, slope * y)       # LeakyReLU(0.1)
    o_ref[...] = y.astype(o_ref.dtype)


def convolution_block_forward(x, weight, bias, gamma, beta, *,
                              stride=1, padding=1, bn_act=True,
                              eps=1e-5, slope=0.1,
                              compute_dtype=jnp.bfloat16, out_dtype=jnp.float32,
                              tile_g_out=1024, stats_tile_mult=4,
                              data_format="NCHW"):
    """Forward pass equivalent to ConvolutionBlock.forward (train-mode BatchNorm).

    tile_g_out / stats_tile_mult are in PACKED rows (1 packed row = G output pixels) and
    are clamped by the VMEM budget and the problem size.
    """
    if data_format == "NCHW":
        N, Cin, H, W = x.shape
        x_nhwc = jnp.transpose(x, (0, 2, 3, 1))
    else:                                               # "NHWC"
        N, H, W, Cin = x.shape
        x_nhwc = x
    Cout, _, KH, KW = weight.shape
    OH = (H + 2 * padding - KH) // stride + 1
    OW = (W + 2 * padding - KW) // stride + 1
    M = N * OH * OW
    K = KH * KW * Cin

    # ---- packed output layout ---------------------------------------------------------
    G = max(1, 128 // Cout)                 # output rows packed per 128-lane row
    CL = _round_up(G * Cout, 128)           # packed lane width (128 whenever Cout <= 128)
    Kp = _round_up(K, 8)                    # per-row contraction pad (NOT padded to 128)
    GK = G * Kp                             # packed contraction dim
    Mg = _cdiv(M, G)                        # packed rows needed
    NC = 2                                  # stats-pass core split (no-op on 1-TC chips)

    pdt = jnp.dtype(compute_dtype).itemsize
    odt = jnp.dtype(out_dtype).itemsize

    # ---- tile sizes derived from VMEM capacity (v7x: 64 MiB/TC, v5e/v6e: 128 MiB) ------
    try:
        vmem_cap = int(pltpu.get_tpu_info().vmem_capacity_bytes)
    except Exception:
        vmem_cap = 64 << 20                 # conservative (v7x per-core) fallback
    fixed = 2 * GK * CL * pdt + (1 << 20)   # double-buffered weight + slack
    budget = max(vmem_cap // 4 - fixed, 1 << 20)

    # pass-2 per packed-row VMEM: 2x patches (double-buffer) + 2x out + f32 temp
    row2 = 2 * GK * pdt + 2 * CL * odt + CL * 4
    tm2 = max(8, min(int(tile_g_out), budget // row2, _round_up(Mg, 8)) // 8 * 8)

    # pass-1 tile = multiple of the pass-2 tile (keeps one shared padded patch array)
    row1 = 2 * GK * pdt + CL * 4
    mult = max(1, min(int(stats_tile_mult), (budget // row1) // tm2, _cdiv(Mg, NC * tm2)))
    tm1 = tm2 * mult
    Mgp = _round_up(Mg, NC * tm1)           # divisible by both NC*tm1 and tm2
    vmem_limit = int(min(vmem_cap // 2, 128 << 20))

    # ---- glue: NHWC spatial pad + im2col, done once in compute_dtype -------------------
    xc = x_nhwc.astype(compute_dtype)
    xc = jnp.pad(xc, ((0, 0), (padding, padding), (padding, padding), (0, 0)))
    cols = []
    for i in range(KH):
        for j in range(KW):
            cols.append(xc[:, i:i + stride * OH:stride, j:j + stride * OW:stride, :])
    patches = jnp.stack(cols, axis=3).reshape(M, K)                     # [M, K] compute_dtype
    patches = jnp.pad(patches, ((0, Mgp * G - M), (0, Kp - K)))         # pad once, target dtype
    patches = patches.reshape(Mgp, GK)      # pack G consecutive rows (row-major -> free view)

    # ---- weight: OIHW -> (Kp, Cout) -> block-diagonal (GK, CL) -------------------------
    w2d = jnp.transpose(weight, (2, 3, 1, 0)).reshape(K, Cout).astype(jnp.float32)
    w2d = jnp.pad(w2d, ((0, Kp - K), (0, 0)))                           # (Kp, Cout)
    wbd = jnp.kron(jnp.eye(G, dtype=jnp.float32), w2d)                  # (G*Kp, G*Cout)
    wbd = jnp.pad(wbd, ((0, 0), (0, CL - G * Cout))).astype(compute_dtype)

    n1 = Mgp // (NC * tm1)
    n2 = Mgp // tm2

    if bn_act:
        # ---- pass 1: per-lane sum / sum-of-squares, sharded over NC cores -------------
        p1_spec = pl.BlockSpec((tm1, GK), lambda c, i: (c * n1 + i, 0))
        w1_spec = pl.BlockSpec((GK, CL), lambda c, i: (0, 0))
        acc_spec = pl.BlockSpec((8, CL), lambda c, i: (c, 0))
        flops1 = 2 * Mgp * GK * CL + 2 * Mgp * CL
        bytes1 = Mgp * GK * pdt + GK * CL * pdt + 2 * NC * 8 * CL * 4
        sums, sqs = pl.pallas_call(
            _matmul_stats_kernel,
            out_shape=(jax.ShapeDtypeStruct((NC * 8, CL), jnp.float32),
                       jax.ShapeDtypeStruct((NC * 8, CL), jnp.float32)),
            grid_spec=pltpu.PrefetchScalarGridSpec(
                num_scalar_prefetch=0, grid=(NC, n1),
                in_specs=[p1_spec, w1_spec],
                out_specs=(acc_spec, acc_spec)),
            compiler_params=pltpu.CompilerParams(
                dimension_semantics=("parallel", "arbitrary"),
                vmem_limit_bytes=vmem_limit),
            cost_estimate=pl.CostEstimate(flops=flops1, transcendentals=0,
                                          bytes_accessed=bytes1),
        )(patches, wbd)

        # Fold BN (train-mode, biased variance) into one per-channel scale/shift.
        # Zero-padded rows / K-cols contribute 0 to both sums, so dividing by the true M
        # keeps statistics exact.  Channel c appears in G lanes (and NC core rows): sum them.
        sums2 = sums.reshape(NC, 8, CL)[:, 0, :]        # all 8 sublanes hold the same value
        sqs2 = sqs.reshape(NC, 8, CL)[:, 0, :]
        ch_sum = jnp.sum(sums2, axis=0)[:G * Cout].reshape(G, Cout).sum(axis=0)
        ch_sq = jnp.sum(sqs2, axis=0)[:G * Cout].reshape(G, Cout).sum(axis=0)
        mean = ch_sum / M
        var = jnp.maximum(ch_sq / M - mean * mean, 0.0)
        inv_std = jax.lax.rsqrt(var + eps)
        scale_c = gamma.astype(jnp.float32) * inv_std
        shift_c = beta.astype(jnp.float32) - mean * scale_c
    else:
        scale_c = jnp.ones((Cout,), jnp.float32)
        shift_c = bias.astype(jnp.float32)

    # Lane-packed scale/shift; padded lanes are zeroed (their matmul output is zero too).
    scale = jnp.pad(jnp.tile(scale_c, G), (0, CL - G * Cout)).reshape(1, CL)
    shift = jnp.pad(jnp.tile(shift_c, G), (0, CL - G * Cout)).reshape(1, CL)

    # ---- pass 2: matmul + fused affine (+ LeakyReLU), lane-packed output slab ----------
    flops2 = 2 * Mgp * GK * CL + 3 * Mgp * CL
    bytes2 = Mgp * GK * pdt + GK * CL * pdt + Mgp * CL * odt + 2 * CL * 4
    out2d = pl.pallas_call(
        functools.partial(_matmul_affine_kernel, slope=slope, apply_act=bn_act),
        out_shape=jax.ShapeDtypeStruct((Mgp, CL), out_dtype),
        grid_spec=pltpu.PrefetchScalarGridSpec(
            num_scalar_prefetch=0, grid=(n2,),
            in_specs=[pl.BlockSpec((tm2, GK), lambda i: (i, 0)),
                      pl.BlockSpec((GK, CL), lambda i: (0, 0)),
                      pl.BlockSpec((1, CL), lambda i: (0, 0)),
                      pl.BlockSpec((1, CL), lambda i: (0, 0))],
            out_specs=pl.BlockSpec((tm2, CL), lambda i: (i, 0))),
        compiler_params=pltpu.CompilerParams(
            dimension_semantics=("parallel",),
            vmem_limit_bytes=vmem_limit),
        cost_estimate=pl.CostEstimate(flops=flops2, transcendentals=0,
                                      bytes_accessed=bytes2),
    )(patches, wbd, scale, shift)

    # Un-pack: (Mgp, CL) -> (Mgp*G, Cout) is a row-major reshape; pads are sliced off.
    out = out2d[:, :G * Cout].reshape(Mgp * G, Cout)[:M].reshape(N, OH, OW, Cout)
    if data_format == "NCHW":
        out = jnp.transpose(out, (0, 3, 1, 2))
    return out


def _reference_bn_forward(x, weight, gamma, beta, *, stride, padding, eps, slope):
    """Pure-JAX reference (train-mode BN) used only for a silent sanity check."""
    y = jax.lax.conv_general_dilated(
        x, weight, (stride, stride), [(padding, padding), (padding, padding)],
        dimension_numbers=("NCHW", "OIHW", "NCHW"))
    mean = jnp.mean(y, axis=(0, 2, 3), keepdims=True)
    var = jnp.mean((y - mean) ** 2, axis=(0, 2, 3), keepdims=True)
    yh = (y - mean) * jax.lax.rsqrt(var + eps)
    yb = yh * gamma.reshape(1, -1, 1, 1) + beta.reshape(1, -1, 1, 1)
    return jnp.where(yb >= 0, yb, slope * yb)


if __name__ == "__main__":
    # Small shapes consistent with a YOLO conv block.
    N, Cin, H, W = 2, 4, 16, 16
    Cout, KH, KW = 8, 3, 3
    stride, padding = 1, 1

    key = jax.random.PRNGKey(0)
    k_x, k_w, k_b = jax.random.split(key, 3)

    x = jax.random.normal(k_x, (N, Cin, H, W), dtype=jnp.float32)
    fan_in = Cin * KH * KW
    weight = jax.random.normal(k_w, (Cout, Cin, KH, KW), dtype=jnp.float32) / jnp.sqrt(fan_in)
    bias = jax.random.normal(k_b, (Cout,), dtype=jnp.float32)   # only used when bn_act=False
    gamma = jnp.ones((Cout,), dtype=jnp.float32)                # BatchNorm2d default init
    beta = jnp.zeros((Cout,), dtype=jnp.float32)                # BatchNorm2d default init

    ref_bn = jax.block_until_ready(_reference_bn_forward(
        x, weight, gamma, beta, stride=stride, padding=padding, eps=1e-5, slope=0.1))

    # f32 path with tiny tiles -> multiple stats tiles per core + multiple output tiles
    # (exercises the cross-tile accumulator, the 2-core stats split, and the padding logic).
    out_f32 = convolution_block_forward(
        x, weight, bias, gamma, beta, stride=stride, padding=padding, bn_act=True,
        compute_dtype=jnp.float32, tile_g_out=8, stats_tile_mult=1)
    out_f32 = jax.block_until_ready(out_f32)
    assert out_f32.shape == (N, Cout, H, W)
    assert jnp.allclose(out_f32, ref_bn, atol=2e-4, rtol=2e-4)

    # bf16 matmul operands (perf default on v5e/v6e/v7x), VMEM-derived default tiles.
    out_bf16 = convolution_block_forward(
        x, weight, bias, gamma, beta, stride=stride, padding=padding, bn_act=True,
        compute_dtype=jnp.bfloat16)
    out_bf16 = jax.block_until_ready(out_bf16)
    assert jnp.allclose(out_bf16, ref_bn, atol=5e-2, rtol=5e-2)

    # bn_act=False path: plain conv + bias (single pass, no stats kernel).
    ref_nb = jax.lax.conv_general_dilated(
        x, weight, (stride, stride), [(padding, padding), (padding, padding)],
        dimension_numbers=("NCHW", "OIHW", "NCHW")) + bias.reshape(1, -1, 1, 1)
    out_nb = convolution_block_forward(
        x, weight, bias, gamma, beta, stride=stride, padding=padding, bn_act=False,
        compute_dtype=jnp.float32)
    out_nb = jax.block_until_ready(out_nb)
    assert jnp.allclose(out_nb, ref_nb, atol=2e-4, rtol=2e-4)

    print("KERNEL_OK")
</pallas_src>

<mosaic_0001>
module attributes {stable_mosaic.version = 11 : i64} {
  func.func @_matmul_stats_kernel(%arg0: i32, %arg1: i32, %arg2: memref<8x640xf32, #tpu.memory_space<vmem>>, %arg3: memref<640x128xf32, #tpu.memory_space<vmem>>, %arg4: memref<8x128xf32, #tpu.memory_space<vmem>>, %arg5: memref<8x128xf32, #tpu.memory_space<vmem>>) attributes {dimension_semantics = [#tpu.dimension_semantics<parallel>, #tpu.dimension_semantics<arbitrary>], iteration_bounds = array<i64: 2, 2>, scalar_prefetch = 0 : i64, scratch_operands = 0 : i64, tpu.core_type = #tpu.core_type<tc>, window_params = [{transform_indices = @transform_0, window_bounds = array<i64: 8, 640>}, {pipeline_mode = #tpu.pipeline_mode<synchronous>, transform_indices = @transform_1, window_bounds = array<i64: 640, 128>}, {transform_indices = @transform_2, window_bounds = array<i64: 8, 128>}, {transform_indices = @transform_3, window_bounds = array<i64: 8, 128>}]} {
    %c0 = arith.constant 0 : index
    %c0_0 = arith.constant 0 : index
    %0 = vector.load %arg2[%c0, %c0_0] : memref<8x640xf32, #tpu.memory_space<vmem>>, vector<8x640xf32>
    %c0_1 = arith.constant 0 : index
    %c0_2 = arith.constant 0 : index
    %1 = vector.load %arg3[%c0_1, %c0_2] : memref<640x128xf32, #tpu.memory_space<vmem>>, vector<640x128xf32>
    %cst = arith.constant dense<0.000000e+00> : vector<8x128xf32>
    %2 = tpu.matmul %0, %1, %cst {dimension_numbers = #tpu.dot_dimension_numbers<[1], [0], [0], [1], [0, 0, 1, 1], [], []>} : vector<8x640xf32>, vector<640x128xf32>, vector<8x128xf32> -> vector<8x128xf32>
    %c0_i32 = arith.constant 0 : i32
    %3 = arith.cmpi eq, %arg1, %c0_i32 : i32
    %4 = arith.extui %3 : i1 to i32
    %c0_i32_3 = arith.constant 0 : i32
    %5 = arith.cmpi ne, %4, %c0_i32_3 : i32
    scf.if %5 {
      %cst_14 = arith.constant 0.000000e+00 : f32
      %21 = vector.broadcast %cst_14 : f32 to vector<8x128xf32>
      %c0_15 = arith.constant 0 : index
      %c0_16 = arith.constant 0 : index
      %22 = vector.load %arg4[%c0_15, %c0_16] : memref<8x128xf32, #tpu.memory_space<vmem>>, vector<8x128xf32>
      tpu.vector_store %arg4[%c0_15, %c0_16], %21 {strides = array<i32>} : memref<8x128xf32, #tpu.memory_space<vmem>>, vector<8x128xf32>,
      %cst_17 = arith.constant 0.000000e+00 : f32
      %23 = vector.broadcast %cst_17 : f32 to vector<8x128xf32>
      %c0_18 = arith.constant 0 : index
      %c0_19 = arith.constant 0 : index
      %24 = vector.load %arg5[%c0_18, %c0_19] : memref<8x128xf32, #tpu.memory_space<vmem>>, vector<8x128xf32>
      tpu.vector_store %arg5[%c0_18, %c0_19], %23 {strides = array<i32>} : memref<8x128xf32, #tpu.memory_space<vmem>>, vector<8x128xf32>,
    } else {
    }
    %cst_4 = arith.constant dense<0.000000e+00> : vector<128xf32>
    %6 = vector.multi_reduction <add>, %2, %cst_4 [0] : vector<8x128xf32> to vector<128xf32>
    %7 = vector.shape_cast %6 : vector<128xf32> to vector<1x128xf32>
    %8 = arith.mulf %2, %2 : vector<8x128xf32>
    %cst_5 = arith.constant dense<0.000000e+00> : vector<128xf32>
    %9 = vector.multi_reduction <add>, %8, %cst_5 [0] : vector<8x128xf32> to vector<128xf32>
    %10 = vector.shape_cast %9 : vector<128xf32> to vector<1x128xf32>
    %c0_6 = arith.constant 0 : index
    %c0_7 = arith.constant 0 : index
    %11 = vector.load %arg4[%c0_6, %c0_7] : memref<8x128xf32, #tpu.memory_space<vmem>>, vector<8x128xf32>
    %12 = vector.shape_cast %7 : vector<1x128xf32> to vector<1x128xf32>
    %13 = vector.broadcast %12 : vector<1x128xf32> to vector<8x128xf32>
    %14 = arith.addf %11, %13 : vector<8x128xf32>
    %c0_8 = arith.constant 0 : index
    %c0_9 = arith.constant 0 : index
    %15 = vector.load %arg4[%c0_8, %c0_9] : memref<8x128xf32, #tpu.memory_space<vmem>>, vector<8x128xf32>
    tpu.vector_store %arg4[%c0_8, %c0_9], %14 {strides = array<i32>} : memref<8x128xf32, #tpu.memory_space<vmem>>, vector<8x128xf32>,
    %c0_10 = arith.constant 0 : index
    %c0_11 = arith.constant 0 : index
    %16 = vector.load %arg5[%c0_10, %c0_11] : memref<8x128xf32, #tpu.memory_space<vmem>>, vector<8x128xf32>
    %17 = vector.shape_cast %10 : vector<1x128xf32> to vector<1x128xf32>
    %18 = vector.broadcast %17 : vector<1x128xf32> to vector<8x128xf32>
    %19 = arith.addf %16, %18 : vector<8x128xf32>
    %c0_12 = arith.constant 0 : index
    %c0_13 = arith.constant 0 : index
    %20 = vector.load %arg5[%c0_12, %c0_13] : memref<8x128xf32, #tpu.memory_space<vmem>>, vector<8x128xf32>
    tpu.vector_store %arg5[%c0_12, %c0_13], %19 {strides = array<i32>} : memref<8x128xf32, #tpu.memory_space<vmem>>, vector<8x128xf32>,
    return
  }
  func.func @transform_0(%arg0: i32, %arg1: i32) -> (i32, i32) {
    %c2_i32 = arith.constant 2 : i32
    %0 = arith.muli %arg0, %c2_i32 : i32
    %1 = arith.addi %0, %arg1 : i32
    %c0_i32 = arith.constant 0 : i32
    %c0_i32_0 = arith.constant 0 : i32
    return %1, %c0_i32 : i32, i32
  }
  func.func @transform_1(%arg0: i32, %arg1: i32) -> (i32, i32) {
    %c0_i32 = arith.constant 0 : i32
    %c0_i32_0 = arith.constant 0 : i32
    %c0_i32_1 = arith.constant 0 : i32
    return %c0_i32, %c0_i32_0 : i32, i32
  }
  func.func @transform_2(%arg0: i32, %arg1: i32) -> (i32, i32) {
    %c0_i32 = arith.constant 0 : i32
    %c0_i32_0 = arith.constant 0 : i32
    return %arg0, %c0_i32 : i32, i32
  }
  func.func @transform_3(%arg0: i32, %arg1: i32) -> (i32, i32) {
    %c0_i32 = arith.constant 0 : i32
    %c0_i32_0 = arith.constant 0 : i32
    return %arg0, %c0_i32 : i32, i32
  }
}

</mosaic_0001>

<bundles_post_ra>
// kernel: tpu_custom_call.1
= control target key start
LH: loop header
LB: loop body
LE: loop exit
PB: predicated region body
PF: predicated region fallthrough
CT: control target
= control target key end

     0   :  { %s1622_s0 = inlined_call_operand.hbm [shape: f32[32,640], index: 0, kind: input, shape index: {}]   ;;  %s1623_s1 = inlined_call_operand.hbm [shape: f32[640,128], index: 1, kind: input, shape index: {}]   ;;  %s1624_s2 = inlined_call_operand.hbm [shape: f32[16,128], index: 2, kind: output, shape index: {0}]   ;;  %s1625_s3 = inlined_call_operand.hbm [shape: f32[16,128], index: 3, kind: output, shape index: {1}]  }
   0x1   :  { %1639 = sst [smem:[#allocation19_spill]] %s1623_s1 }
   0x2   :  { %1640 = sst [smem:[#allocation20_spill]] %s1624_s2 }
   0x3   :  { %1641 = sst [smem:[#allocation21_spill]] %s1625_s3 }
   0x4   :  { %9 = vsyncpa [#allocation3], 0 }
   0x5   :  { %11 = vsyncpa [#allocation3 + $0x1], 0 }
   0x6   :  { %12 = vsyncpa [#allocation6], 0 }
   0x7   :  { %13 = vsyncpa [#allocation4], 0 }
   0x8   :  { %15 = vsyncpa [#allocation4 + $0x1], 0 }
   0x9   :  { %16 = vsyncpa [#allocation9], 0 }
   0xa   :  { %18 = vsyncpa [#allocation9 + $0x1], 0  ;;  %s1315_s12 = smov 0   ;;  %s1317_s13 = smov 0  }
   0xb   :  { %s1319_s14 = smov 0   ;;  %s1321_s15 = smov 0  }
   0xc   :  { %s1323_s16 = smov 0   ;;  %s1325_s17 = smov 0  }
   0xd   :  { %s1327_s18 = smov 0   ;;  %s1329_s19 = smov 0  }
   0xe   :  { %s1331_s20 = smov 0   ;;  %s1333_s21 = smov 0  }
   0xf   :  { %s1335_s22 = smov 0  }
  0x10 LB: > { %1642 = sst [smem:[#allocation14_spill]] %s1243_s12  ;;  %s710_s23 = sadd.s32 4294967295, %s1283_s22   ;;  %s1283_s22 = sphi %s1335_s22, %s24_s22   ;;  %s1279_s21 = sphi %s1333_s21, %s1676_s21   ;;  %s1275_s20 = sphi %s1331_s20, %s1675_s20   ;;  %s1271_s19 = sphi %s1329_s19, %s1674_s19   ;;  %s1267_s18 = sphi %s1327_s18, %s1666_s18   ;;  %s1263_s17 = sphi %s1325_s17, %s1673_s17   ;;  %s1259_s16 = sphi %s1323_s16, %s1672_s16   ;;  %s1255_s15 = sphi %s1321_s15, %s1671_s15   ;;  %s1251_s14 = sphi %s1319_s14, %s1670_s14   ;;  %s1247_s13 = sphi %s1317_s13, %s1669_s13   ;;  %s1243_s12 = sphi %s1315_s12, %s1668_s12  }
  0x11   : > { %1643 = sst [smem:[#allocation15_spill]] %s1275_s20  ;;  %s711_s24 = sadd.s32 4294967294, %s1283_s22  }
  0x12   : > { %p60_p0 = scmp.ne.s32.totalorder %s1259_s16, %s1255_s15  ;;  %p1371_p1 = scmp.eq.s32.totalorder %s710_s23, 0 }
  0x13   : > { %p104_p2 = scmp.ne.s32.totalorder %s1251_s14, %s1247_s13  ;;  %p105_p3 = scmp.eq.s32.totalorder %s710_s23, 3 }
  0x14   : > { %s1644_s25 = scalar_select %p1371_p1, 1, 0 }
  0x15   : > { %p1379_p4 = por %p1371_p1, %p60_p0  ;;  %p110_p5 = scmp.ne.s32.totalorder %s1247_s13, %s1243_s12 }
  0x16   : > { %p1385_p6 = por %p105_p3, %p104_p2  ;;  %p111_p7 = scmp.eq.s32.totalorder %s711_s24, 3 }
  0x17   : > { %s1645_s26 = scalar_select %p1379_p4, 1, 0 }
  0x18   : > { %s1646_s27 = scalar_select %p1385_p6, 1, 0 }
  0x19   : > { %p714_p8 = scmp.ge.s32.totalorder %s1283_s22, 1  ;;  %p144_p9 = scmp.lt.s32.totalorder %s1283_s22, 5 }
  0x1a   : > { %1647 = sst [smem:[#allocation16_spill]] %s1646_s27  ;;  %p1391_p10 = por %p111_p7, %p110_p5 }
  0x1b   : > { %p1395_p11 = pnand %p714_p8, %p144_p9  ;;  %s1285_s30 = smov [#allocation5]  }
  0x1c   : > { %s1648_s28 = scalar_select %p1391_p10, 1, 0 }
  0x1d   : > { %s1650_s29 = scalar_select %p1395_p11, 1, 0 }
  0x1e   : > { %1649 = sst [smem:[#allocation17_spill]] %s1648_s28  ;;  %s156_s4 = sshll.u32 %s1285_s30, 4  ;;  %s157_s4 = int_to_ptr.vmem [resolvable:$true] %s156_s4 }
  0x1f   : > { %p953_p12 = pneg %p1395_p11  ;;  %s1652_s1 = sld [smem:[#allocation19_spill]] }
  0x21   : > { %p1403_p13 = pnand %p953_p12, %p1371_p1 }
  0x23   : > { %p1069_p2 = pneg %p1403_p13 }
  0x25   : > { %s1067_s8 = scalar_lea.hbm %s1652_s1, 10240 }
  0x26   : > { %p1068_p0 = scmp.ne.s32.totalorder %s1652_s1, %s1067_s8  ;;  %p1074_p7 = scmp.lt.u32.totalorder %s1067_s8, %s1652_s1 }
  0x28   : > { %p1070_p3 = pnand %p1069_p2, %p1068_p0 }
  0x2a   : > { %p1071_p5 = pneg %p1070_p3 }
  0x2c   : > { %p1076_p8 = pnand %p1074_p7, %p1071_p5 }
  0x2e   : > { %1079 = shalt.err (!%p1076_p8)
}
  0x2f   : > { %s1080_s23 = scalar_lea.vmem %s157_s4, 10240  ;;  %p1088_p6 = scmp.lt.s32.totalorder %s157_s4, %s157_s4 }
  0x30   : > { %p1081_p9 = scmp.ne.s32.totalorder %s157_s4, %s1080_s23  ;;  %p1089_p1 = scmp.lt.s32.totalorder %s1080_s23, %s1080_s23 }
  0x32   : > { %p1083_p12 = pnand %p1081_p9, %p1069_p2  ;;  %p1090_p4 = por %p1089_p1, %p1088_p6 }
  0x34   : > { %p1084_p10 = pneg %p1083_p12 }
  0x36   : > { %p1091_p11 = pnand %p1090_p4, %p1084_p10 }
  0x38   : > { %1094 = shalt.err (!%p1091_p11)
}
  0x39   : > { %s1286_s24 = smov 128   ;;  %s1287_s30 = smov 8  }
  0x3a   : > { %956 = dma.hbm_to_vmem [thread:$0]  (!%p1403_p13), %s1652_s1, 10240, %s157_s4, [#allocation6], %s1286_s24, %s1286_s24, %s1287_s30  }
  0x3b   : > { %s33_s8 = sadd.s32 1, %s1275_s20  ;;  %s36_s9 = sadd.s32 1, %s1279_s21 }
  0x3c   : > { %p34_p1 = scmp.ge.s32.totalorder %s33_s8, 2  ;;  %s712_s10 = sshll.u32 %s1279_s21, 1 }
  0x3d   : > { %s41_s11 = sadd.s32 %s1275_s20, %s712_s10  ;;  %s47_s15 = sadd.s32 1, %s1263_s17 }
  0x3e   : > { %s1678_s8 = smov (%p34_p1, %s33_s8), 0  ;;  %s1680_s9 = smov (!%p34_p1, %s36_s9), %s1279_s21 }
  0x3f   : > { %p54_p4 = scmp.ne.s32.totalorder %s1263_s17, %s1259_s16  ;;  %p55_p6 = scmp.eq.s32.totalorder %s1283_s22, 0 }
  0x40   : > { %p38_p10 = scmp.ge.s32.totalorder %s1680_s9, 2  ;;  %s94_s5 = sadd.s32 1, %s1251_s14 }
  0x41   : > { %p1435_p11 = por %p55_p6, %p54_p4  ;;  %p969_p13 = scmp.lt.s32.totalorder %s1283_s22, 4 }
  0x42   : > { %s1682_s9 = smov (%p38_p10, %s1680_s9), 0  ;;  %s170_s23 = sand.u32 1, %s1263_s17  }
  0x43   : > { %1654 = sst [smem:[#allocation18_spill]] %s1682_s9  ;;  %s941_s24 = smul.u32 640, %s41_s11 }
  0x44   : > { %s713_s30 = sshll.u32 %s1682_s9, 1  ;;  %s91_s6 = ssub.s32 %s1279_s21, %s1682_s9 }
  0x45   : > { %s43_s7 = sadd.s32 %s713_s30, %s1678_s8  ;;  %p92_p0 = scmp.eq.s32.totalorder %s91_s6, 0 }
  0x46   : > { %s44_s10 = ssub.s32 %s41_s11, %s43_s7  ;;  %s940_s1 = smul.u32 40, %s170_s23 }
  0x47   : > { %p45_p2 = scmp.eq.s32.totalorder %s44_s10, 0  ;;  %s1456_s2 = scalar_lea.hbm %s1622_s0, %s941_s24 }
  0x48   : > { %s1448_s20 = scalar_select %p92_p0, %s1251_s14, %s94_s5  }
  0x49   : > { %s1451_s28 = scalar_select %p45_p2, %s1263_s17, %s47_s15  }
  0x4a   : > { %s174_s27 = scalar_lea.vmem [#allocation2], %s940_s1  ;;  %p1462_p3 = pnand %p969_p13, %p1435_p11 }
  0x4b   : > { %s184_s9 = sshll.u32 %s174_s27, 4  ;;  %s171_s15 = scalar_lea.sflag [#allocation3], %s170_s23  ;;  %s1466_s9 = int_to_ptr.vmem [resolvable:$true] %s184_s9 }
  0x4c   : > { %s1095_s3 = scalar_lea.hbm %s1456_s2, 640  ;;  %p1097_p7 = pneg %p1462_p3 }
  0x4d   : > { %p1096_p5 = scmp.ne.s32.totalorder %s1456_s2, %s1095_s3  ;;  %s1100_s27 = scalar_lea.hbm %s1622_s0, 2560 }
  0x4e   : > { %p1101_p12 = scmp.lt.u32.totalorder %s1456_s2, %s1622_s0  ;;  %p1102_p1 = scmp.lt.u32.totalorder %s1100_s27, %s1095_s3 }
  0x4f   : > { %p1098_p8 = pnand %p1097_p7, %p1096_p5  ;;  %p1104_p6 = scmp.lt.u32.totalorder %s1095_s3, %s1456_s2 }
  0x50   : > { %p1103_p4 = por %p1102_p1, %p1101_p12 }
  0x51   : > { %p1099_p9 = pneg %p1098_p8 }
  0x52   : > { %p1105_p10 = por %p1104_p6, %p1103_p4 }
  0x54   : > { %p1106_p11 = pnand %p1105_p10, %p1099_p9 }
  0x56   : > { %1109 = shalt.err (!%p1106_p11)
}
  0x57   : > { %s1110_s23 = scalar_lea.vmem %s1466_s9, 640  ;;  %s1288_s24 = smov [#allocation2]  }
  0x58   : > { %p1111_p13 = scmp.ne.s32.totalorder %s1466_s9, %s1110_s23  ;;  %s1115_s30 = sshll.u32 %s1288_s24, 4  ;;  %s1116_s30 = int_to_ptr.vmem [resolvable:$false] %s1115_s30 }
  0x59   : > { %s1117_s6 = scalar_lea.vmem %s1116_s30, 1280  ;;  %p1118_p5 = scmp.lt.s32.totalorder %s1466_s9, %s1116_s30 }
  0x5a   : > { %p1113_p0 = pnand %p1111_p13, %p1097_p7  ;;  %p1119_p8 = scmp.lt.s32.totalorder %s1117_s6, %s1110_s23 }
  0x5c   : > { %p1114_p2 = pneg %p1113_p0  ;;  %p1120_p12 = por %p1119_p8, %p1118_p5 }
  0x5e   : > { %p1121_p1 = pnand %p1120_p12, %p1114_p2 }
  0x60   : > { %1124 = shalt.err (!%p1121_p1)
}
  0x61   : > { %960 = dma.hbm_to_vmem [thread:$0]  (!%p1462_p3), %s1456_s2, 640, %s1466_s9, %s171_s15  }
  0x62   : > { %p1656_p9 = scmp.ne.s32.totalorder %s1650_s29, 0 }
  0x63   : > { %s195_s7 = sand.u32 (!%p1656_p9), 1, %s1259_s16   ;;  %p1657_p7 = scmp.ne.s32.totalorder (!%p1656_p9), %s1645_s26, 0 }
  0x64   : > { %193 = sbr.rel (%p1656_p9) target bundleno = 444 (0x1bc), region = 28  ;;  %s196_s3 = scalar_lea.sflag (!%p1656_p9), [#allocation3], %s195_s7 }
  0x65   : > { %s942_s10 = smul.u32 (!%p1656_p9), 40, %s195_s7 }
  0x67   : > { %s1496_s1 = scalar_lea.vmem (!%p1656_p9), [#allocation2], %s942_s10 }
  0x6b   : > { %1226 = dma.done.wait (%p1657_p7), %s196_s3, 640  }
  0x6c   : > { %1228 = vsyncadd (%p1657_p7), %s196_s3, 4294966656  ;;  %p1658_p4 = scmp.ne.s32.totalorder %s1644_s25, 0 }
  0x6e   : > { %1230 = dma.done.wait (%p1658_p4), [#allocation6], 10240  }
  0x6f   : > { %1232 = vsyncadd (%p1658_p4), [#allocation6], 4294957056  ;;  %s1507_s2 = sand.u32 1, %s1247_s13   ;;  %v254_v0 = vld [vmem:[#allocation5 + $0x80] sm:$0xff]  ;;  %v255_v1 = vld [vmem:[#allocation5 + $0x88] sm:$0xff]  ;;  %vm1290_vm0 = vmmov 0  }
  0x70   : > { %s721_s29 = sshll.u32 %s1507_s2, 3  ;;  %v286_v2 = vld [vmem:[#allocation5 + $0x180] sm:$0xff]  ;;  %v852_v3 = vpack.c.bf16 %v255_v1, %v254_v0  ;;  %v287_v4 = vld [vmem:[#allocation5 + $0x188] sm:$0xff]  ;;  %v256_v11 = vld [vmem:[#allocation5 + $0x90] sm:$0xff]  ;;  %p723_p3 = scmp.ne.s32.totalorder %s1267_s18, 0 }
  0x71   : > { %v238_v5 = vld [vmem:[#allocation5] sm:$0xff]  ;;  %v239_v6 = vld [vmem:[#allocation5 + $0x8] sm:$0xff]  ;;  %v884_v7 = vpack.c.bf16 %v287_v4, %v286_v2  ;;  %v257_v13 = vld [vmem:[#allocation5 + $0x98] sm:$0xff]  ;;  %s223_s25 = scalar_lea.vmem [#allocation7], %s721_s29  ;;  %s1519_s26 = scalar_lea.vmem [#allocation8], %s721_s29 }
  0x72   : > { %v854_v8 = vpack.c.bf16 %v239_v6, %v238_v5  ;;  %v270_v9 = vld [vmem:[#allocation5 + $0x100] sm:$0xff]  ;;  %v271_v10 = vld [vmem:[#allocation5 + $0x108] sm:$0xff]  ;;  %853 = vmatprep.subr.bf16.mxu0 %v852_v3  ;;  %v288_v14 = vld [vmem:[#allocation5 + $0x190] sm:$0xff]  ;;  %v856_v16 = vpack.c.bf16 %v257_v13, %v256_v11 }
  0x73   : > { %v886_v12 = vpack.c.bf16 %v271_v10, %v270_v9  ;;  %v289_v15 = vld [vmem:[#allocation5 + $0x198] sm:$0xff]  ;;  %885 = vmatprep.subr.bf16.mxu1 %v884_v7  ;;  %v240_v18 = vld [vmem:[#allocation5 + $0x10] sm:$0xff]  ;;  %v258_v23 = vld [vmem:[#allocation5 + $0xa0] sm:$0xff] }
  0x74   : > { %855 = vmatpush3.bf16.msra.mxu0 %v854_v8  ;;  %v888_v17 = vpack.c.bf16 %v289_v15, %v288_v14  ;;  %v241_v19 = vld [vmem:[#allocation5 + $0x18] sm:$0xff]  ;;  %v272_v20 = vld [vmem:[#allocation5 + $0x110] sm:$0xff]  ;;  %v259_v24 = vld [vmem:[#allocation5 + $0xa8] sm:$0xff] }
  0x75   : > { %887 = vmatpush3.bf16.msra.mxu1 %v886_v12  ;;  %v858_v21 = vpack.c.bf16 %v241_v19, %v240_v18  ;;  %v273_v22 = vld [vmem:[#allocation5 + $0x118] sm:$0xff]  ;;  %857 = vmatprep.subr.bf16.mxu0 %v856_v16  ;;  %v860_v26 = vpack.c.bf16 %v259_v24, %v258_v23  ;;  %v290_v27 = vld [vmem:[#allocation5 + $0x1a0] sm:$0xff]  ;;  %v291_v28 = vld [vmem:[#allocation5 + $0x1a8] sm:$0xff] }
  0x76   : > { %889 = vmatprep.subr.bf16.mxu1 %v888_v17  ;;  %v890_v25 = vpack.c.bf16 %v273_v22, %v272_v20  ;;  %v242_v29 = vld [vmem:[#allocation5 + $0x20] sm:$0xff]  ;;  %v892_v30 = vpack.c.bf16 %v291_v28, %v290_v27  ;;  %v243_v31 = vld [vmem:[#allocation5 + $0x28] sm:$0xff]  ;;  %v260_v35 = vld [vmem:[#allocation5 + $0xb0] sm:$0xff] }
  0x77   : > { %v274_v32 = vld [vmem:[#allocation5 + $0x120] sm:$0xff]  ;;  %v275_v33 = vld [vmem:[#allocation5 + $0x128] sm:$0xff]  ;;  %v862_v34 = vpack.c.bf16 %v243_v31, %v242_v29  ;;  %v261_v36 = vld [vmem:[#allocation5 + $0xb8] sm:$0xff] }
  0x78   : > { %859 = vmatpush3.bf16.msra.mxu0 %v858_v21  ;;  %v292_v37 = vld [vmem:[#allocation5 + $0x1b0] sm:$0xff]  ;;  %v894_v38 = vpack.c.bf16 %v275_v33, %v274_v32  ;;  %v864_v39 = vpack.c.bf16 %v261_v36, %v260_v35  ;;  %v293_v40 = vld [vmem:[#allocation5 + $0x1b8] sm:$0xff]  ;;  %v262_v46 = vld [vmem:[#allocation5 + $0xc0] sm:$0xff] }
  0x79   : > { %891 = vmatpush3.bf16.msra.mxu1 %v890_v25  ;;  %861 = vmatprep.subr.bf16.mxu0 %v860_v26  ;;  %v244_v41 = vld [vmem:[#allocation5 + $0x30] sm:$0xff]  ;;  %v245_v42 = vld [vmem:[#allocation5 + $0x38] sm:$0xff]  ;;  %v896_v43 = vpack.c.bf16 %v293_v40, %v292_v37  ;;  %v263_v47 = vld [vmem:[#allocation5 + $0xc8] sm:$0xff] }
  0x7a   : > { %893 = vmatprep.subr.bf16.mxu1 %v892_v30  ;;  %v276_v44 = vld [vmem:[#allocation5 + $0x130] sm:$0xff]  ;;  %v277_v45 = vld [vmem:[#allocation5 + $0x138] sm:$0xff]  ;;  %v294_v48 = vld [vmem:[#allocation5 + $0x1c0] sm:$0xff]  ;;  %v866_v50 = vpack.c.bf16 %v245_v42, %v244_v41  ;;  %v868_v52 = vpack.c.bf16 %v263_v47, %v262_v46 }
  0x7b   : > { %v295_v49 = vld [vmem:[#allocation5 + $0x1c8] sm:$0xff]  ;;  %v898_v51 = vpack.c.bf16 %v277_v45, %v276_v44  ;;  %v246_v53 = vld [vmem:[#allocation5 + $0x40] sm:$0xff]  ;;  %v264_v58 = vld [vmem:[#allocation5 + $0xd0] sm:$0xff]  ;;  %v1291_v45 = vmov 0.0  }
  0x7c   : > { %863 = vmatpush3.bf16.msra.mxu0 %v862_v34  ;;  %v247_v54 = vld [vmem:[#allocation5 + $0x48] sm:$0xff]  ;;  %v278_v55 = vld [vmem:[#allocation5 + $0x140] sm:$0xff]  ;;  %v900_v56 = vpack.c.bf16 %v295_v49, %v294_v48  ;;  %v265_v59 = vld [vmem:[#allocation5 + $0xd8] sm:$0xff] }
  0x7d   : > { %895 = vmatpush3.bf16.msra.mxu1 %v894_v38  ;;  %865 = vmatprep.subr.bf16.mxu0 %v864_v39  ;;  %v279_v57 = vld [vmem:[#allocation5 + $0x148] sm:$0xff]  ;;  %v296_v60 = vld [vmem:[#allocation5 + $0x1d0] sm:$0xff]  ;;  %v297_v61 = vld [vmem:[#allocation5 + $0x1d8] sm:$0xff]  ;;  %v870_v62 = vpack.c.bf16 %v247_v54, %v246_v53  ;;  %v872_v0 = vpack.c.bf16 %v265_v59, %v264_v58  ;;  %v1289_v39 = vmov 0.0|0.0  }
  0x7e   : > { %897 = vmatprep.subr.bf16.mxu1 %v896_v43  ;;  %v902_v63 = vpack.c.bf16 %v279_v57, %v278_v55  ;;  %v248_v1 = vld [vmem:[#allocation5 + $0x50] sm:$0xff]  ;;  %v249_v2 = vld [vmem:[#allocation5 + $0x58] sm:$0xff]  ;;  %v904_v4 = vpack.c.bf16 %v297_v61, %v296_v60  ;;  %v266_v6 = vld [vmem:[#allocation5 + $0xe0] sm:$0xff] }
  0x7f   : > { %v280_v3 = vld [vmem:[#allocation5 + $0x150] sm:$0xff]  ;;  %v281_v5 = vld [vmem:[#allocation5 + $0x158] sm:$0xff]  ;;  %v267_v7 = vld [vmem:[#allocation5 + $0xe8] sm:$0xff]  ;;  %v874_v10 = vpack.c.bf16 %v249_v2, %v248_v1 }
  0x80   : > { %867 = vmatpush3.bf16.msra.mxu0 %v866_v50  ;;  %v298_v8 = vld [vmem:[#allocation5 + $0x1e0] sm:$0xff]  ;;  %v299_v9 = vld [vmem:[#allocation5 + $0x1e8] sm:$0xff]  ;;  %v906_v13 = vpack.c.bf16 %v281_v5, %v280_v3  ;;  %v876_v14 = vpack.c.bf16 %v267_v7, %v266_v6  ;;  %v268_v20 = vld [vmem:[#allocation5 + $0xf0] sm:$0xff] }
  0x81   : > { %899 = vmatpush3.bf16.msra.mxu1 %v898_v51  ;;  %869 = vmatprep.subr.bf16.mxu0 %v868_v52  ;;  %v250_v11 = vld [vmem:[#allocation5 + $0x60] sm:$0xff]  ;;  %v251_v12 = vld [vmem:[#allocation5 + $0x68] sm:$0xff]  ;;  %v908_v18 = vpack.c.bf16 %v299_v9, %v298_v8  ;;  %v269_v21 = vld [vmem:[#allocation5 + $0xf8] sm:$0xff]  ;;  %v1292_v9 = vmov (!%p723_p3), 0.0  }
  0x82   : > { %901 = vmatprep.subr.bf16.mxu1 %v900_v56  ;;  %v282_v15 = vld [vmem:[#allocation5 + $0x160] sm:$0xff]  ;;  %v236_v17 = vld [vmem:[%s1496_s1 + $0x18] sm:$0xff]  ;;  %v301_v23 = vld [vmem:[#allocation5 + $0x1f8] sm:$0xff]  ;;  %v878_v24 = vpack.c.bf16 %v251_v12, %v250_v11  ;;  %v880_v26 = vpack.c.bf16 %v269_v21, %v268_v20  ;;  %532 = vst [vmem:[%s223_s25] sm:$0xff] (!%p723_p3), %v1292_v9 }
  0x83   : > { %v234_v16 = vld [vmem:[%s1496_s1 + $0x8] sm:$0xff]  ;;  %v283_v19 = vld [vmem:[#allocation5 + $0x168] sm:$0xff]  ;;  %v300_v22 = vld [vmem:[#allocation5 + $0x1f0] sm:$0xff]  ;;  %452 = vmatprep.mubr.f32.mxu1 %v236_v17  ;;  %533 = vst [vmem:[%s1519_s26] sm:$0xff] (!%p723_p3), %v1292_v9 }
  0x84   : > { %871 = vmatpush3.bf16.msra.mxu0 %v870_v62  ;;  %382 = vmatprep.mubr.f32.mxu0 %v234_v16  ;;  %v910_v25 = vpack.c.bf16 %v283_v19, %v282_v15  ;;  %v252_v27 = vld [vmem:[#allocation5 + $0x70] sm:$0xff]  ;;  %v253_v28 = vld [vmem:[#allocation5 + $0x78] sm:$0xff]  ;;  %v912_v29 = vpack.c.bf16 %v301_v23, %v300_v22  ;;  %v302_v34 = vld [vmem:[#allocation5 + $0x200] sm:$0xff] }
  0x85   : > { %903 = vmatpush3.bf16.msra.mxu1 %v902_v63  ;;  %873 = vmatprep.subr.bf16.mxu0 %v872_v0  ;;  %v284_v30 = vld [vmem:[#allocation5 + $0x170] sm:$0xff]  ;;  %v285_v31 = vld [vmem:[#allocation5 + $0x178] sm:$0xff]  ;;  %v882_v32 = vpack.c.bf16 %v253_v28, %v252_v27  ;;  %v303_v35 = vld [vmem:[#allocation5 + $0x208] sm:$0xff] }
  0x86   : > { %905 = vmatprep.subr.bf16.mxu1 %v904_v4  ;;  %v914_v33 = vpack.c.bf16 %v285_v31, %v284_v30  ;;  %v233_v36 = vld [vmem:[%s1496_s1] sm:$0xff]  ;;  %v917_v37 = vpack.c.bf16 %v303_v35, %v302_v34  ;;  %v235_v38 = vld [vmem:[%s1496_s1 + $0x10] sm:$0xff] }
  0x87   : > { %v304_v40 = vld [vmem:[#allocation5 + $0x210] sm:$0xff]  ;;  %v305_v41 = vld [vmem:[#allocation5 + $0x218] sm:$0xff]  ;;  %v306_v43 = vld [vmem:[#allocation5 + $0x220] sm:$0xff] }
  0x88   : > { %875 = vmatpush3.bf16.msra.mxu0 %v874_v10  ;;  %v920_v42 = vpack.c.bf16 %v305_v41, %v304_v40  ;;  %v307_v44 = vld [vmem:[#allocation5 + $0x228] sm:$0xff]  ;;  %v308_v47 = vld [vmem:[#allocation5 + $0x230] sm:$0xff]  ;;  %v309_v48 = vld [vmem:[#allocation5 + $0x238] sm:$0xff] }
  0x89   : > { %907 = vmatpush3.bf16.msra.mxu1 %v906_v13  ;;  %877 = vmatprep.subr.bf16.mxu0 %v876_v14  ;;  %v923_v46 = vpack.c.bf16 %v307_v44, %v306_v43  ;;  %v926_v49 = vpack.c.bf16 %v309_v48, %v308_v47  ;;  %v310_v50 = vld [vmem:[#allocation5 + $0x240] sm:$0xff]  ;;  %v311_v51 = vld [vmem:[#allocation5 + $0x248] sm:$0xff]  ;;  %v312_v53 = vld [vmem:[#allocation5 + $0x250] sm:$0xff] }
  0x8a   : > { %909 = vmatprep.subr.bf16.mxu1 %v908_v18  ;;  %v929_v52 = vpack.c.bf16 %v311_v51, %v310_v50  ;;  %v313_v54 = vld [vmem:[#allocation5 + $0x258] sm:$0xff]  ;;  %v314_v56 = vld [vmem:[#allocation5 + $0x260] sm:$0xff]  ;;  %v315_v57 = vld [vmem:[#allocation5 + $0x268] sm:$0xff] }
  0x8b   : > { %v932_v55 = vpack.c.bf16 %v313_v54, %v312_v53  ;;  %v935_v58 = vpack.c.bf16 %v315_v57, %v314_v56  ;;  %v316_v59 = vld [vmem:[#allocation5 + $0x270] sm:$0xff]  ;;  %v317_v60 = vld [vmem:[#allocation5 + $0x278] sm:$0xff] }
  0x8c   : > { %879 = vmatpush3.bf16.msra.mxu0 %v878_v24  ;;  %v938_v61 = vpack.c.bf16 %v317_v60, %v316_v59  ;;  %v237_v62 = vld [vmem:[%s1496_s1 + $0x20] sm:$0xff] }
  0x8d   : > { %911 = vmatpush3.bf16.msra.mxu1 %v910_v25  ;;  %881 = vmatprep.subr.bf16.mxu0 %v880_v26 }
  0x8e   : > { %913 = vmatprep.subr.bf16.mxu1 %v912_v29 }
  0x90   : > { %883 = vmatpush3.bf16.msra.mxu0 %v882_v32 }
  0x91   : > { %915 = vmatpush3.bf16.msra.mxu1 %v914_v33  ;;  %916 = vmatprep.subr.bf16.mxu0 %v1289_v39 }
  0x93   : > { %383 = vmatmul.mubr.f32.vlgmr.msra.gmra.mrb[0].mxu0 %v233_v36 }
  0x94   : > { %453 = vmatmul.mubr.f32.vlgmr.msra.gmra.mrb[0].mxu1 %v235_v38  ;;  %918 = vmatpush3.bf16.msra.mxu0 %v917_v37 }
  0x95   : > { %919 = vmatprep.subr.bf16.mxu0 %v1289_v39  ;;  %849 = vmatprep.mubr.msk.f32.mxu0 %vm1290_vm0, %v1291_v45 }
  0x98   : > { %921 = vmatpush3.bf16.msra.mxu0 %v920_v42 }
  0x99   : > { %922 = vmatprep.subr.bf16.mxu0 %v1289_v39 }
  0x9c   : > { %924 = vmatpush3.bf16.msra.mxu0 %v923_v46 }
  0x9d   : > { %925 = vmatprep.subr.bf16.mxu0 %v1289_v39 }
  0xa0   : > { %927 = vmatpush3.bf16.msra.mxu0 %v926_v49 }
  0xa1   : > { %928 = vmatprep.subr.bf16.mxu0 %v1289_v39 }
  0xa4   : > { %930 = vmatpush3.bf16.msra.mxu0 %v929_v52 }
  0xa5   : > { %931 = vmatprep.subr.bf16.mxu0 %v1289_v39 }
  0xa8   : > { %933 = vmatpush3.bf16.msra.mxu0 %v932_v55 }
  0xa9   : > { %934 = vmatprep.subr.bf16.mxu0 %v1289_v39 }
  0xac   : > { %936 = vmatpush3.bf16.msra.mxu0 %v935_v58 }
  0xad   : > { %937 = vmatprep.subr.bf16.mxu0 %v1289_v39 }
  0xb0   : > { %939 = vmatpush3.bf16.msra.mxu0 %v938_v61 }
  0xb3   : > { %850 = vmatmul.mubr.f32.vlgmr.msra.gmra.mrb[2].mxu0 %v237_v62 }
 0x166   : > { %v762_v63 = vpop.f32.mrb[0].mxu0 }
 0x167   : > { %v797_v0 = vpop.f32.mrb[0].mxu1  ;;  %v763_v1 = vpop.f32.mrb[1].mxu0 }
 0x168   : > { %v764_v2 = vadd.f32 %v763_v1, %v762_v63  ;;  %v798_v3 = vpop.f32.mrb[1].mxu1 }
 0x169   : > { %v799_v4 = vadd.f32 %v798_v3, %v797_v0 }
 0x16b   : > { %v455_v5 = vadd.f32 %v799_v4, %v764_v2 }
 0x181   : > { %531 = sbr.rel (%p723_p3) target bundleno = 392 (0x188), region = 40 }
 0x186   : > { %v524_v6 = vpop.f32.mrb[2].mxu0 }
 0x187   : > { %v525_v7 = vadd.f32 %v524_v6, %v455_v5  ;;  %v851_v8 = vpop.f32.mrb[3].mxu0 }
 0x188 PF: > { %v547_v20 = vld [vmem:[%s223_s25] sm:$0xff]  ;;  %s726_s18 = sshll.u32 %s1271_s19, 7  ;;  %s572_s9 = sshll.u32 %s223_s25, 4  ;;  %v550_v23 = vld [vmem:[%s1519_s26] sm:$0xff]  ;;  %s1531_s9 = int_to_ptr.vmem [resolvable:$true] %s572_s9 }
 0x189   : > { %v534_v10 = vrot.slane %v525_v7, 4  ;;  %v540_v11 = vmul.f32 %v525_v7, %v525_v7  ;;  %s1659_s11 = sld [smem:[#allocation16_spill]]  ;;  %s585_s15 = sshll.u32 %s1519_s26, 4  ;;  %s1538_s15 = int_to_ptr.vmem [resolvable:$true] %s585_s15 }
 0x18a   : > { %s1660_s5 = sld [smem:[#allocation20_spill]]  ;;  %s1661_s24 = sld [smem:[#allocation21_spill]] }
 0x18b   : > { %v535_v12 = vadd.f32 %v534_v10, %v525_v7  ;;  %v541_v13 = vrot.slane %v540_v11, 4  ;;  %s554_s6 = scalar_lea.sflag [#allocation4], %s1507_s2  ;;  %s1125_s7 = scalar_lea.vmem %s1531_s9, 128 }
 0x18c   : > { %p1126_p6 = scmp.ne.s32.totalorder %s1531_s9, %s1125_s7  ;;  %s1293_s10 = smov [#allocation7]  }
 0x18d   : > { %v536_v14 = vrot.slane %v535_v12, 2  ;;  %v542_v15 = vadd.f32 %v541_v13, %v540_v11  ;;  %s1129_s3 = sshll.u32 %s1293_s10, 4  ;;  %s1130_s3 = int_to_ptr.vmem [resolvable:$false] %s1129_s3 }
 0x18e   : > { %s1131_s1 = scalar_lea.vmem %s1130_s3, 256  ;;  %p1132_p0 = scmp.lt.s32.totalorder %s1531_s9, %s1130_s3 }
 0x18f   : > { %v537_v16 = vadd.f32 %v536_v14, %v535_v12  ;;  %v543_v17 = vrot.slane %v542_v15, 2  ;;  %p1662_p10 = scmp.ne.s32.totalorder %s1659_s11, 0  ;;  %p1133_p2 = scmp.lt.s32.totalorder %s1131_s1, %s1125_s7 }
 0x190   : > { %s1529_s4 = scalar_lea.hbm %s1660_s5, %s726_s18  ;;  %s1536_s30 = scalar_lea.hbm %s1661_s24, %s726_s18 }
 0x191   : > { %v538_v18 = vrot.slane %v537_v16, 1  ;;  %v544_v19 = vadd.f32 %v543_v17, %v542_v15  ;;  %p1127_p11 = pnand %p1126_p6, %p1662_p10  ;;  %p1134_p5 = por %p1133_p2, %p1132_p0 }
 0x193   : > { %v539_v21 = vadd.f32 %v538_v18, %v537_v16  ;;  %v545_v22 = vrot.slane %v544_v19, 1  ;;  %p1128_p13 = pneg %p1127_p11 }
 0x195   : > { %v548_v24 = vadd.f32 %v547_v20, %v539_v21  ;;  %v546_v25 = vadd.f32 %v545_v22, %v544_v19  ;;  %p1135_p8 = pnand %p1134_p5, %p1128_p13 }
 0x197   : > { %549 = vst [vmem:[%s223_s25] sm:$0xff] %v548_v24  ;;  %v551_v26 = vadd.f32 %v550_v23, %v546_v25 }
 0x198   : > { %1138 = shalt.err (!%p1135_p8)
}
 0x199   : > { %s1139_s29 = scalar_lea.hbm %s1529_s4, 128  ;;  %s1143_s12 = scalar_lea.hbm %s1660_s5, 256 }
 0x19a   : > { %p1140_p12 = scmp.ne.s32.totalorder %s1529_s4, %s1139_s29  ;;  %p1144_p7 = scmp.lt.u32.totalorder %s1529_s4, %s1660_s5 }
 0x19b   : > { %p1145_p4 = scmp.lt.u32.totalorder %s1143_s12, %s1139_s29  ;;  %p1147_p6 = scmp.lt.u32.totalorder %s1139_s29, %s1529_s4 }
 0x19c   : > { %p1141_p1 = pnand %p1140_p12, %p1662_p10 }
 0x19d   : > { %p1146_p3 = por %p1145_p4, %p1144_p7 }
 0x19e   : > { %p1142_p9 = pneg %p1141_p1 }
 0x19f   : > { %p1148_p11 = por %p1147_p6, %p1146_p3 }
 0x1a1   : > { %p1149_p13 = pnand %p1148_p11, %p1142_p9 }
 0x1a3   : > { %1152 = shalt.err (!%p1149_p13)
}
 0x1a4   : > { %949 = dma.vmem_to_hbm [thread:$0]  (%p1662_p10), %s1531_s9, 128, %s1529_s4, %s554_s6   ;;  %552 = vst [vmem:[%s1519_s26] sm:$0xff] %v551_v26 }
 0x1a5   : > { %s559_s23 = scalar_lea.sflag [#allocation9], %s1507_s2  ;;  %s1153_s7 = scalar_lea.vmem %s1538_s15, 128 }
 0x1a6   : > { %p1154_p0 = scmp.ne.s32.totalorder %s1538_s15, %s1153_s7  ;;  %s1294_s10 = smov [#allocation8]  }
 0x1a7   : > { %s1157_s3 = sshll.u32 %s1294_s10, 4  ;;  %s1158_s3 = int_to_ptr.vmem [resolvable:$false] %s1157_s3 }
 0x1a8   : > { %p1155_p2 = pnand %p1154_p0, %p1662_p10  ;;  %s1159_s1 = scalar_lea.vmem %s1158_s3, 256 }
 0x1a9   : > { %p1160_p8 = scmp.lt.s32.totalorder %s1538_s15, %s1158_s3  ;;  %p1161_p12 = scmp.lt.s32.totalorder %s1159_s1, %s1153_s7 }
 0x1aa   : > { %p1156_p5 = pneg %p1155_p2 }
 0x1ab   : > { %p1162_p1 = por %p1161_p12, %p1160_p8 }
 0x1ad   : > { %p1163_p9 = pnand %p1162_p1, %p1156_p5 }
 0x1af   : > { %1166 = shalt.err (!%p1163_p9)
}
 0x1b0   : > { %s1167_s2 = scalar_lea.hbm %s1536_s30, 128  ;;  %s1171_s4 = scalar_lea.hbm %s1661_s24, 256 }
 0x1b1   : > { %p1168_p7 = scmp.ne.s32.totalorder %s1536_s30, %s1167_s2  ;;  %p1172_p6 = scmp.lt.u32.totalorder %s1536_s30, %s1661_s24 }
 0x1b2   : > { %p1173_p11 = scmp.lt.u32.totalorder %s1171_s4, %s1167_s2  ;;  %p1175_p0 = scmp.lt.u32.totalorder %s1167_s2, %s1536_s30 }
 0x1b3   : > { %p1169_p4 = pnand %p1168_p7, %p1662_p10 }
 0x1b4   : > { %p1174_p13 = por %p1173_p11, %p1172_p6 }
 0x1b5   : > { %p1170_p3 = pneg %p1169_p4 }
 0x1b6   : > { %p1176_p2 = por %p1175_p0, %p1174_p13 }
 0x1b8   : > { %p1177_p5 = pnand %p1176_p2, %p1170_p3 }
 0x1ba   : > { %1180 = shalt.err (!%p1177_p5)
}
 0x1bb   : > { %950 = dma.vmem_to_hbm [thread:$0]  (%p1662_p10), %s1538_s15, 128, %s1536_s30, %s559_s23  }
 0x1bc PF: > { %s1663_s25 = sld [smem:[#allocation14_spill]]  ;;  %s1664_s18 = sld [smem:[#allocation17_spill]] }
 0x1bd   : > { %p971_p8 = scmp.ge.s32.totalorder %s1283_s22, 2 }
 0x1c2   : > { %s597_s12 = sand.u32 1, %s1663_s25   ;;  %p1665_p12 = scmp.ne.s32.totalorder %s1664_s18, 0 }
 0x1c3   : > { %s598_s27 = scalar_lea.sflag [#allocation4], %s597_s12 }
 0x1c4   : > { %p962_p1 = pnand %p971_p8, %p1665_p12 }
 0x1c6   : > { %1234 = dma.done.wait (!%p962_p1), %s598_s27, 128  }
 0x1c7   : > { %1236 = vsyncadd (!%p962_p1), %s598_s27, 4294967168  ;;  %s607_s19 = scalar_lea.sflag [#allocation9], %s597_s12 }
 0x1c8   : > { %1238 = dma.done.wait (!%p962_p1), %s607_s19, 128  }
 0x1c9   : > { %1240 = vsyncadd (!%p962_p1), %s607_s19, 4294967168  ;;  %s24_s22 = sadd.s32 1, %s1283_s22   ;;  %s1666_s18 = sld [smem:[#allocation15_spill]] }
 0x1ca   : > { %p21_p9 = scmp.ge.s32.totalorder %s24_s22, 6   ;;  %s1667_s11 = sld [smem:[#allocation18_spill]] }
 0x1cb   : > { %s1668_s12 = smov %s1247_s13  ;;  %s1669_s13 = smov %s1251_s14 }
 0x1cc   : > { %s1670_s14 = smov %s1448_s20  ;;  %s1671_s15 = smov %s1259_s16 }
 0x1cd   : > { %s1672_s16 = smov %s1263_s17  ;;  %s1673_s17 = smov %s1451_s28 }
 0x1ce   : > { %s1674_s19 = smov %s1279_s21  ;;  %s1675_s20 = smov %s1678_s8 }
 0x1cf   :  { %23 = sbr.rel (!%p21_p9) target bundleno = 16 (0x10), region = 98 }
 0x1d0   : > { %s1676_s21 = smov %s1667_s11 }
 0x1d6   :  { %612 = vsyncpa [#allocation3], 1 }
 0x1d7   :  { %614 = vsyncpa [#allocation3 + $0x1], 1 }
 0x1d8   :  { %615 = vsyncpa [#allocation6], 1 }
 0x1d9   :  { %616 = vsyncpa [#allocation4], 1 }
 0x1da   :  { %618 = vsyncpa [#allocation4 + $0x1], 1 }
 0x1db   :  { %619 = vsyncpa [#allocation9], 1 }
 0x1dc   :  { %621 = vsyncpa [#allocation9 + $0x1], 1 }

</bundles_post_ra>
